<compile_context>
chip_gen: v5e
topology: v5e:2x2
jax: 0.10.0
libtpu: 0.0.40
codegen_flags: <defaults>
</compile_context>

<pallas_src>
import functools

import jax
import jax.numpy as jnp
from jax import lax
from jax.experimental import pallas as pl
from jax.experimental.pallas import tpu as pltpu


def _round_up(a, m):
    return ((a + m - 1) // m) * m


# ----------------------------------------------------------------------------
# Generation-aware VMEM budgeting
# ----------------------------------------------------------------------------
@functools.lru_cache(maxsize=1)
def _hw_config():
    """Returns (tile_budget_bytes, vmem_limit_bytes, multi_core)."""
    kind = ""
    try:
        kind = jax.devices()[0].device_kind.lower()
    except Exception:
        pass
    phys = None
    try:
        phys = int(pltpu.get_tpu_info().vmem_capacity_bytes)
    except Exception:
        phys = None
    if phys is None or phys <= 0:
        # v5e/v6e: 128 MiB physical VMEM; be conservative (64 MiB) otherwise
        # (covers v7x and unknown generations).
        phys = 128 * 1024 * 1024 if ("v5" in kind or "v6" in kind) else 64 * 1024 * 1024
    # v7x has 2 TensorCores per chip -> keep enough grid steps for both.
    multi_core = "v7" in kind
    # Scoped VMEM limit: leave 16 MiB physical headroom, cap at 96 MiB.
    vmem_limit = max(32 * 1024 * 1024, min(phys - 16 * 1024 * 1024, 96 * 1024 * 1024))
    # Tile budget = what the whole working set may occupy (I/O double-buffers
    # + f32 temporaries), with a small margin for constants / compiler scratch.
    budget = vmem_limit - 4 * 1024 * 1024
    return budget, vmem_limit, multi_core


# Per-element working-set cost model used by both paths:
#   2 * (in + out) bytes   : double-buffered input and output tiles
#   2 * 4 bytes            : ~2 live full-tile f32 temporaries in the kernel
def _bytes_per_element(in_bytes, out_bytes):
    return 2 * (in_bytes + out_bytes) + 2 * 4


# ----------------------------------------------------------------------------
# channels_last: (R, C) rows, normalize over last (lane) axis
# ----------------------------------------------------------------------------
def _ln_rows_kernel(x_ref, wb_ref, o_ref, *, eps):
    # x_ref: (block_rows, C) ; wb_ref: (2, C) f32  (row 0 = weight, row 1 = bias)
    x = x_ref[...].astype(jnp.float32)
    mean = jnp.mean(x, axis=-1, keepdims=True)
    mean_sq = jnp.mean(x * x, axis=-1, keepdims=True)
    var = jnp.maximum(mean_sq - mean * mean, 0.0)   # single-pass, clamp cancellation
    inv = lax.rsqrt(var + eps)                      # EUP slot (free vs HBM)
    w = wb_ref[0:1, :]
    b = wb_ref[1:2, :]
    o_ref[...] = ((x - mean) * inv * w + b).astype(o_ref.dtype)


def _choose_block_rows(R, C, in_bytes, out_bytes, budget, multi_core, requested):
    bytes_per_row = C * _bytes_per_element(in_bytes, out_bytes)
    br = max(8, budget // bytes_per_row)            # VMEM budget drives the tile
    if requested is not None:                        # debug-only upper bound
        br = min(br, int(requested))
    br = min(br, _round_up(R, 8))
    if multi_core:
        # Keep >= ~8 grid steps (when R is large enough) so both TCs get work.
        br = min(br, max(1024, _round_up(pl.cdiv(R, 8), 8)))
    return max(8, (br // 8) * 8)


def _layernorm_channels_last_2d(x2d, wb, eps, block_rows):
    R, C = x2d.shape
    budget, vmem_limit, multi_core = _hw_config()
    br = _choose_block_rows(R, C, x2d.dtype.itemsize, x2d.dtype.itemsize,
                            budget, multi_core, block_rows)
    grid = (pl.cdiv(R, br),)  # ragged last block is padded, never written back
    return pl.pallas_call(
        functools.partial(_ln_rows_kernel, eps=eps),
        out_shape=jax.ShapeDtypeStruct((R, C), x2d.dtype),
        grid_spec=pltpu.PrefetchScalarGridSpec(
            num_scalar_prefetch=0,
            grid=grid,
            in_specs=[
                pl.BlockSpec((br, C), lambda i: (i, 0)),
                pl.BlockSpec((2, C), lambda i: (0, 0)),
            ],
            out_specs=pl.BlockSpec((br, C), lambda i: (i, 0)),
        ),
        compiler_params=pltpu.CompilerParams(
            dimension_semantics=("parallel",),
            vmem_limit_bytes=vmem_limit,
        ),
    )(x2d, wb)


# ----------------------------------------------------------------------------
# channels_first: (N, C, H*W), normalize over the C (sublane) axis; multiple
# batch images folded per block — no wrapper-side transposes.
# ----------------------------------------------------------------------------
def _ln_cf_kernel(x_ref, wb_ref, o_ref, *, eps):
    # x_ref: (n_blk, C, block_lanes) ; wb_ref: (2, C, 1) f32
    x = x_ref[...].astype(jnp.float32)
    mean = jnp.mean(x, axis=1, keepdims=True)        # sublane reduce (XLU)
    mean_sq = jnp.mean(x * x, axis=1, keepdims=True)
    var = jnp.maximum(mean_sq - mean * mean, 0.0)
    inv = lax.rsqrt(var + eps)
    w = wb_ref[0:1]
    b = wb_ref[1:2]
    o_ref[...] = ((x - mean) * inv * w + b).astype(o_ref.dtype)


def _choose_cf_block(N, C, HW, in_bytes, out_bytes, budget, multi_core, requested):
    bytes_per_lane = C * _bytes_per_element(in_bytes, out_bytes)
    max_lanes = max(128, budget // bytes_per_lane)   # total lanes per block (n_blk*bl)
    if requested is not None:                         # debug-only upper bound
        max_lanes = min(max_lanes, max(128, int(requested)))
    if HW <= max_lanes:
        bl = HW                                       # full-extent lane block
        n_blk = max(1, min(N, max_lanes // max(HW, 1)))
        if multi_core:
            # Keep >= ~4 grid steps over the batch so both v7x TCs stay busy.
            n_blk = min(n_blk, max(1, pl.cdiv(N, 4)))
    else:
        n_blk = 1
        bl = max(128, (max_lanes // 128) * 128)       # tiled lanes: multiple of 128
    return n_blk, bl


def _layernorm_channels_first(x, wb, eps, block_lanes):
    N, C, H, W = x.shape
    HW = H * W
    x3 = x.reshape(N, C, HW)            # free reshape: trailing dims contiguous
    budget, vmem_limit, multi_core = _hw_config()
    n_blk, bl = _choose_cf_block(N, C, HW, x.dtype.itemsize, x.dtype.itemsize,
                                 budget, multi_core, block_lanes)
    wb3 = wb.reshape(2, C, 1)
    grid = (pl.cdiv(N, n_blk), pl.cdiv(HW, bl))
    y3 = pl.pallas_call(
        functools.partial(_ln_cf_kernel, eps=eps),
        out_shape=jax.ShapeDtypeStruct((N, C, HW), x.dtype),
        grid_spec=pltpu.PrefetchScalarGridSpec(
            num_scalar_prefetch=0,
            grid=grid,
            in_specs=[
                pl.BlockSpec((n_blk, C, bl), lambda n, l: (n, 0, l)),
                pl.BlockSpec((2, C, 1), lambda n, l: (0, 0, 0)),
            ],
            out_specs=pl.BlockSpec((n_blk, C, bl), lambda n, l: (n, 0, l)),
        ),
        compiler_params=pltpu.CompilerParams(
            dimension_semantics=("parallel", "parallel"),
            vmem_limit_bytes=vmem_limit,
        ),
    )(x3, wb3)
    return y3.reshape(N, C, H, W)


# ----------------------------------------------------------------------------
# Public wrapper (matches the PyTorch module forward)
# ----------------------------------------------------------------------------
def layer_norm(x, weight, bias, eps=1e-6, data_format="channels_last",
               block_rows=None, block_lanes=None):
    if data_format not in ("channels_last", "channels_first"):
        raise NotImplementedError
    # Pack weight/bias into a single pre-cast f32 constant tile.
    wb = jnp.stack([weight.reshape(-1), bias.reshape(-1)]).astype(jnp.float32)
    if data_format == "channels_last":
        # x: (..., C) — F.layer_norm over the last axis.
        orig_shape = x.shape
        C = orig_shape[-1]
        y2d = _layernorm_channels_last_2d(x.reshape(-1, C), wb, eps, block_rows)
        return y2d.reshape(orig_shape)
    else:
        # x: (N, C, H, W) — normalize over dim 1, affine per channel.
        return _layernorm_channels_first(x, wb, eps, block_lanes)


# ----------------------------------------------------------------------------
# Pure-JAX references (mirror the PyTorch module)
# ----------------------------------------------------------------------------
def _reference(x, weight, bias, eps, data_format):
    xf = x.astype(jnp.float32)
    if data_format == "channels_last":
        u = jnp.mean(xf, axis=-1, keepdims=True)
        s = jnp.mean((xf - u) ** 2, axis=-1, keepdims=True)
        xn = (xf - u) / jnp.sqrt(s + eps)
        return xn * weight + bias
    else:
        u = jnp.mean(xf, axis=1, keepdims=True)
        s = jnp.mean((xf - u) ** 2, axis=1, keepdims=True)
        xn = (xf - u) / jnp.sqrt(s + eps)
        return weight[None, :, None, None] * xn + bias[None, :, None, None]


if __name__ == "__main__":
    key = jax.random.PRNGKey(0)
    k1, k2, k3, k4, k5, k6, k7 = jax.random.split(key, 7)
    eps = 1e-6

    # --- Test 1: channels_first (PyTorch NCHW), small ConvNeXt-ish shape ----
    N, C, H, W = 2, 32, 8, 8
    weight = 1.0 + 0.1 * jax.random.normal(k3, (C,), dtype=jnp.float32)
    bias = 0.05 * jax.random.normal(k4, (C,), dtype=jnp.float32)
    x_cf = jax.random.normal(k1, (N, C, H, W), dtype=jnp.float32)
    y_cf = jax.block_until_ready(
        layer_norm(x_cf, weight, bias, eps, data_format="channels_first"))
    ref_cf = _reference(x_cf, weight, bias, eps, "channels_first")
    assert y_cf.shape == (N, C, H, W)
    assert jnp.max(jnp.abs(y_cf - ref_cf)) < 1e-4

    # --- Test 2: channels_last (NHWC) ---------------------------------------
    x_cl = jax.random.normal(k2, (N, H, W, C), dtype=jnp.float32)
    y_cl = jax.block_until_ready(
        layer_norm(x_cl, weight, bias, eps, data_format="channels_last"))
    ref_cl = _reference(x_cl, weight, bias, eps, "channels_last")
    assert y_cl.shape == (N, H, W, C)
    assert jnp.max(jnp.abs(y_cl - ref_cl)) < 1e-4

    # --- Test 3: channels_last with ragged row grid (debug cap path) --------
    C3 = 48
    w3 = 1.0 + 0.1 * jax.random.normal(k5, (C3,), dtype=jnp.float32)
    b3 = 0.05 * jax.random.normal(k6, (C3,), dtype=jnp.float32)
    x3 = jax.random.normal(k7, (2, 5, 15, C3), dtype=jnp.float32)  # R=150
    y3 = jax.block_until_ready(
        layer_norm(x3, w3, b3, eps, data_format="channels_last", block_rows=64))
    ref3 = _reference(x3, w3, b3, eps, "channels_last")
    assert jnp.max(jnp.abs(y3 - ref3)) < 1e-4

    # --- Test 4: channels_first with ragged lane grid (debug cap path) -------
    x4 = jax.random.normal(k1, (2, C3, 10, 14), dtype=jnp.float32)  # HW=140
    y4 = jax.block_until_ready(
        layer_norm(x4, w3, b3, eps, data_format="channels_first",
                   block_lanes=128))
    ref4 = _reference(x4, w3, b3, eps, "channels_first")
    assert jnp.max(jnp.abs(y4 - ref4)) < 1e-4

    # --- Test 5: bf16 I/O passthrough (halves HBM traffic for bf16 models) --
    x5 = jax.random.normal(k2, (N, H, W, C), dtype=jnp.bfloat16)
    y5 = jax.block_until_ready(
        layer_norm(x5, weight, bias, eps, data_format="channels_last"))
    assert y5.dtype == jnp.bfloat16
    ref5 = _reference(x5, weight, bias, eps, "channels_last")
    assert jnp.max(jnp.abs(y5.astype(jnp.float32) - ref5)) < 6e-2

    print("KERNEL_OK")
</pallas_src>

<mosaic_0001>
module attributes {stable_mosaic.version = 11 : i64} {
  func.func @_ln_cf_kernel(%arg0: i32, %arg1: i32, %arg2: memref<2x32x64xf32, #tpu.memory_space<vmem>>, %arg3: memref<2x32x1xf32, #tpu.memory_space<vmem>>, %arg4: memref<2x32x64xf32, #tpu.memory_space<vmem>>) attributes {dimension_semantics = [#tpu.dimension_semantics<parallel>, #tpu.dimension_semantics<parallel>], iteration_bounds = array<i64: 1, 1>, scalar_prefetch = 0 : i64, scratch_operands = 0 : i64, tpu.core_type = #tpu.core_type<tc>, window_params = [{transform_indices = @transform_0, window_bounds = array<i64: 2, 32, 64>}, {pipeline_mode = #tpu.pipeline_mode<synchronous>, transform_indices = @transform_1, window_bounds = array<i64: 2, 32, 1>}, {transform_indices = @transform_2, window_bounds = array<i64: 2, 32, 64>}]} {
    %c0 = arith.constant 0 : index
    %c0_0 = arith.constant 0 : index
    %c0_1 = arith.constant 0 : index
    %0 = vector.load %arg2[%c0, %c0_0, %c0_1] : memref<2x32x64xf32, #tpu.memory_space<vmem>>, vector<2x32x64xf32>
    %cst = arith.constant dense<0.000000e+00> : vector<2x64xf32>
    %1 = vector.multi_reduction <add>, %0, %cst [1] : vector<2x32x64xf32> to vector<2x64xf32>
    %2 = vector.shape_cast %1 : vector<2x64xf32> to vector<2x1x64xf32>
    %cst_2 = arith.constant 3.200000e+01 : f32
    %3 = vector.broadcast %cst_2 : f32 to vector<2x1x64xf32>
    %4 = arith.divf %2, %3 : vector<2x1x64xf32>
    %5 = arith.mulf %0, %0 : vector<2x32x64xf32>
    %cst_3 = arith.constant dense<0.000000e+00> : vector<2x64xf32>
    %6 = vector.multi_reduction <add>, %5, %cst_3 [1] : vector<2x32x64xf32> to vector<2x64xf32>
    %7 = vector.shape_cast %6 : vector<2x64xf32> to vector<2x1x64xf32>
    %cst_4 = arith.constant 3.200000e+01 : f32
    %8 = vector.broadcast %cst_4 : f32 to vector<2x1x64xf32>
    %9 = arith.divf %7, %8 : vector<2x1x64xf32>
    %10 = arith.mulf %4, %4 : vector<2x1x64xf32>
    %11 = arith.subf %9, %10 : vector<2x1x64xf32>
    %cst_5 = arith.constant 0.000000e+00 : f32
    %12 = vector.broadcast %cst_5 : f32 to vector<2x1x64xf32>
    %13 = arith.maximumf %11, %12 : vector<2x1x64xf32>
    %cst_6 = arith.constant 9.99999997E-7 : f32
    %14 = vector.broadcast %cst_6 : f32 to vector<2x1x64xf32>
    %15 = arith.addf %13, %14 : vector<2x1x64xf32>
    %16 = math.rsqrt %15 : vector<2x1x64xf32>
    %c0_7 = arith.constant 0 : index
    %c0_8 = arith.constant 0 : index
    %c0_9 = arith.constant 0 : index
    %17 = vector.load %arg3[%c0_7, %c0_8, %c0_9] : memref<2x32x1xf32, #tpu.memory_space<vmem>>, vector<1x32x1xf32>
    %c1 = arith.constant 1 : index
    %c0_10 = arith.constant 0 : index
    %c0_11 = arith.constant 0 : index
    %18 = vector.load %arg3[%c1, %c0_10, %c0_11] : memref<2x32x1xf32, #tpu.memory_space<vmem>>, vector<1x32x1xf32>
    %19 = vector.broadcast %4 : vector<2x1x64xf32> to vector<2x32x64xf32>
    %20 = arith.subf %0, %19 : vector<2x32x64xf32>
    %21 = vector.broadcast %16 : vector<2x1x64xf32> to vector<2x32x64xf32>
    %22 = arith.mulf %20, %21 : vector<2x32x64xf32>
    %23 = vector.broadcast %17 : vector<1x32x1xf32> to vector<2x32x64xf32>
    %24 = arith.mulf %22, %23 : vector<2x32x64xf32>
    %25 = vector.broadcast %18 : vector<1x32x1xf32> to vector<2x32x64xf32>
    %26 = arith.addf %24, %25 : vector<2x32x64xf32>
    %c0_12 = arith.constant 0 : index
    %c0_13 = arith.constant 0 : index
    %c0_14 = arith.constant 0 : index
    %27 = vector.load %arg4[%c0_12, %c0_13, %c0_14] : memref<2x32x64xf32, #tpu.memory_space<vmem>>, vector<2x32x64xf32>
    tpu.vector_store %arg4[%c0_12, %c0_13, %c0_14], %26 {strides = array<i32>} : memref<2x32x64xf32, #tpu.memory_space<vmem>>, vector<2x32x64xf32>,
    return
  }
  func.func @transform_0(%arg0: i32, %arg1: i32) -> (i32, i32, i32) {
    %c0_i32 = arith.constant 0 : i32
    %c0_i32_0 = arith.constant 0 : i32
    return %arg0, %c0_i32, %arg1 : i32, i32, i32
  }
  func.func @transform_1(%arg0: i32, %arg1: i32) -> (i32, i32, i32) {
    %c0_i32 = arith.constant 0 : i32
    %c0_i32_0 = arith.constant 0 : i32
    %c0_i32_1 = arith.constant 0 : i32
    %c0_i32_2 = arith.constant 0 : i32
    return %c0_i32, %c0_i32_0, %c0_i32_1 : i32, i32, i32
  }
  func.func @transform_2(%arg0: i32, %arg1: i32) -> (i32, i32, i32) {
    %c0_i32 = arith.constant 0 : i32
    %c0_i32_0 = arith.constant 0 : i32
    return %arg0, %c0_i32, %arg1 : i32, i32, i32
  }
}

</mosaic_0001>

<bundles_post_ra>
// kernel: tpu_custom_call.1
= control target key start
LH: loop header
LB: loop body
LE: loop exit
PB: predicated region body
PF: predicated region fallthrough
CT: control target
= control target key end

     0   :  { %v271_v2 = vmov 0   ;;  %s430_s0 = inlined_call_operand.vmem [shape: f32[2,32,64], index: 0, kind: input, shape index: {}]   ;;  %s431_s1 = inlined_call_operand.vmem [shape: f32[2,32,1], index: 1, kind: input, shape index: {}]   ;;  %s432_s2 = inlined_call_operand.hbm [shape: f32[2,32,64], index: 2, kind: output, shape index: {}]  }
   0x1   :  { %v122_v0 = vld [vmem:[%s431_s1 + $0x10] sm:$0xff]  ;;  %v120_v1 = vld [vmem:[%s431_s1] sm:$0xff]  ;;  %237 = vset.pattern.permute.xlu1 %v271_v2  ;;  %236 = vset.pattern.permute.xlu0 %v271_v2 }
   0x2   :  { %157 = vperm.xlu1 %237, %v122_v0   ;;  %147 = vperm.xlu0 %236, %v120_v1   ;;  %v227_v3 = vld [vmem:[%s431_s1 + $0x20] sm:$0xff] }
   0x3   :  { %7 = vsyncpa [#allocation3], 0  ;;  %238 = vset.pattern.permute.xlu2 %v271_v2  ;;  %v123_v4 = vld [vmem:[%s431_s1 + $0x18] sm:$0xff]  ;;  %v121_v5 = vld [vmem:[%s431_s1 + $0x8] sm:$0xff]  ;;  %vm20_vm0 = vcmask 523264   ;;  %v272_v29 = vmov 32.0  }
   0x4   :  { %175 = vperm.xlu2 %238, %v227_v3   ;;  %v228_v6 = vld [vmem:[%s431_s1 + $0x28] sm:$0xff]  ;;  %v230_v7 = vld [vmem:[%s431_s1 + $0x38] sm:$0xff]  ;;  %v229_v8 = vld [vmem:[%s431_s1 + $0x30] sm:$0xff]  ;;  %239 = vrcp.f32 %v272_v29  ;;  %s215_s15 = sshll.u32 %s432_s2, 4  ;;  %s274_s16 = smov 128   ;;  %s216_s15 = int_to_ptr.hbm [resolvable:$true] %s215_s15 }
   0x5   :  { %v318_v9 = vld [vmem:[%s430_s0] sm:$0xff]  ;;  %v323_v10 = vld [vmem:[%s430_s0 + $0x8] sm:$0xff]  ;;  %v346_v17 = vld [vmem:[%s430_s0 + $0x10] sm:$0xff]  ;;  %s275_s17 = smov 8  }
   0x6   :  { %v328_v11 = vld [vmem:[%s430_s0 + $0x20] sm:$0xff]  ;;  %v333_v12 = vld [vmem:[%s430_s0 + $0x28] sm:$0xff]  ;;  %v21_v13 = vsel %vm20_vm0, %v318_v9, 0.0  ;;  %v22_v14 = vsel %vm20_vm0, %v323_v10, 0.0  ;;  %v56_v16 = vmul.f32 %v318_v9, %v318_v9  ;;  %v351_v18 = vld [vmem:[%s430_s0 + $0x30] sm:$0xff]  ;;  %v57_v21 = vmul.f32 %v323_v10, %v323_v10 }
   0x7   :  { %v34_v15 = vsel %vm20_vm0, %v328_v11, 0.0  ;;  %v23_v19 = vadd.f32 %v22_v14, %v21_v13  ;;  %v35_v20 = vsel %vm20_vm0, %v333_v12, 0.0  ;;  %v60_v22 = vmul.f32 %v328_v11, %v328_v11  ;;  %v366_v26 = vld [vmem:[%s430_s0 + $0x18] sm:$0xff] }
   0x8   :  { %v24_v23 = vsel %vm20_vm0, %v346_v17, 0.0  ;;  %v36_v24 = vadd.f32 %v35_v20, %v34_v15  ;;  %v37_v25 = vsel %vm20_vm0, %v351_v18, 0.0  ;;  %v371_v27 = vld [vmem:[%s430_s0 + $0x38] sm:$0xff]  ;;  %v58_v30 = vmul.f32 %v346_v17, %v346_v17  ;;  %s273_s0 = smov [#allocation2]  }
   0x9   :  { %v25_v28 = vadd.f32 %v24_v23, %v23_v19  ;;  %v61_v31 = vmul.f32 %v333_v12, %v333_v12  ;;  %v26_v32 = vsel %vm20_vm0, %v366_v26, 0.0  ;;  %v39_v34 = vsel %vm20_vm0, %v371_v27, 0.0  ;;  %s213_s12 = sshll.u32 %s273_s0, 4  ;;  %s214_s12 = int_to_ptr.vmem [resolvable:$true] %s213_s12 }
   0xa   :  { %162 = vperm.xlu1 %237, %v123_v4   ;;  %152 = vperm.xlu0 %236, %v121_v5   ;;  %v38_v33 = vadd.f32 %v37_v25, %v36_v24  ;;  %v59_v35 = vmul.f32 %v366_v26, %v366_v26  ;;  %v62_v37 = vmul.f32 %v351_v18, %v351_v18  ;;  %v64_v39 = vsel %vm20_vm0, %v56_v16, 0.0  ;;  %v240_v51 = vpop.eup %239 }
   0xb   :  { %v27_v36 = vadd.f32 %v26_v32, %v25_v28  ;;  %v63_v38 = vmul.f32 %v371_v27, %v371_v27  ;;  %v65_v41 = vsel %vm20_vm0, %v57_v21, 0.0  ;;  %v67_v42 = vsel %vm20_vm0, %v58_v30, 0.0 }
   0xc   :  { %180 = vperm.xlu2 %238, %v228_v6   ;;  %v40_v40 = vadd.f32 %v39_v34, %v38_v33  ;;  %v66_v44 = vadd.f32 %v65_v41, %v64_v39  ;;  %v77_v45 = vsel %vm20_vm0, %v60_v22, 0.0  ;;  %v78_v46 = vsel %vm20_vm0, %v61_v31, 0.0 }
   0xd   :  { %v28_v43 = vrot.slane %v27_v36, 4  ;;  %v69_v48 = vsel %vm20_vm0, %v59_v35, 0.0  ;;  %v79_v49 = vadd.f32 %v78_v46, %v77_v45  ;;  %v80_v50 = vsel %vm20_vm0, %v62_v37, 0.0 }
   0xe   :  { %v41_v47 = vrot.slane %v40_v40, 4  ;;  %v68_v53 = vadd.f32 %v67_v42, %v66_v44  ;;  %v82_v54 = vsel %vm20_vm0, %v63_v38, 0.0  ;;  %v48_v56 = vmul.f32 32.0, %v240_v51 }
   0xf   :  { %v29_v52 = vadd.f32 %v28_v43, %v27_v36  ;;  %v81_v57 = vadd.f32 %v80_v50, %v79_v49  ;;  %vm52_vm1 = vweird.f32 %v240_v51 }
  0x10   :  { %v42_v55 = vadd.f32 %v41_v47, %v40_v40  ;;  %v70_v59 = vadd.f32 %v69_v48, %v68_v53  ;;  %v49_v61 = vsub.f32 1.0, %v48_v56 }
  0x11   :  { %v30_v58 = vrot.slane %v29_v52, 2  ;;  %v83_v62 = vadd.f32 %v82_v54, %v81_v57 }
  0x12   :  { %190 = vperm.xlu1 %237, %v230_v7   ;;  %185 = vperm.xlu0 %236, %v229_v8   ;;  %v43_v60 = vrot.slane %v42_v55, 2  ;;  %v71_v0 = vrot.slane %v70_v59, 4  ;;  %v50_v2 = vmul.f32 %v240_v51, %v49_v61 }
  0x13   :  { %v31_v63 = vadd.f32 %v30_v58, %v29_v52  ;;  %v84_v3 = vrot.slane %v83_v62, 4 }
  0x14   :  { %v44_v1 = vadd.f32 %v43_v60, %v42_v55  ;;  %v72_v4 = vadd.f32 %v71_v0, %v70_v59  ;;  %v51_v8 = vadd.f32 %v240_v51, %v50_v2 }
  0x15   :  { %v32_v5 = vrot.slane %v31_v63, 1  ;;  %v85_v6 = vadd.f32 %v84_v3, %v83_v62 }
  0x16   :  { %v45_v7 = vrot.slane %v44_v1, 1  ;;  %v73_v13 = vrot.slane %v72_v4, 2  ;;  %v53_v21 = vsel %vm52_vm1, %v240_v51, %v51_v8 }
  0x17   :  { %v86_v14 = vrot.slane %v85_v6, 2  ;;  %v33_v16 = vadd.f32 %v32_v5, %v31_v63 }
  0x18   :  { %v74_v15 = vadd.f32 %v73_v13, %v72_v4  ;;  %v46_v20 = vadd.f32 %v45_v7, %v44_v1 }
  0x19   :  { %v87_v19 = vadd.f32 %v86_v14, %v85_v6  ;;  %v395_v24 = vmul.f32 %v53_v21, %v33_v16 }
  0x1a   :  { %v75_v22 = vrot.slane %v74_v15, 1  ;;  %v397_v28 = vmul.f32 %v53_v21, %v46_v20 }
  0x1b   :  { %v88_v23 = vrot.slane %v87_v19, 1  ;;  %v92_v31 = vmul.f32 %v395_v24, %v395_v24  ;;  %v129_v52 = vsub.f32 %v318_v9, %v395_v24  ;;  %v130_v63 = vsub.f32 %v323_v10, %v395_v24 }
  0x1c   :  { %v76_v25 = vadd.f32 %v75_v22, %v74_v15  ;;  %v93_v33 = vmul.f32 %v397_v28, %v397_v28  ;;  %v133_v53 = vsub.f32 %v328_v11, %v397_v28  ;;  %v134_v0 = vsub.f32 %v333_v12, %v397_v28 }
  0x1d   :  { %v89_v29 = vadd.f32 %v88_v23, %v87_v19  ;;  %v131_v3 = vsub.f32 %v346_v17, %v395_v24  ;;  %v132_v4 = vsub.f32 %v366_v26, %v395_v24  ;;  %v136_v10 = vsub.f32 %v371_v27, %v397_v28 }
  0x1e   :  { %v90_v30 = vmul.f32 %v76_v25, %v53_v21  ;;  %v135_v12 = vsub.f32 %v351_v18, %v397_v28 }
  0x1f   :  { %v91_v32 = vmul.f32 %v89_v29, %v53_v21 }
  0x20   :  { %v94_v34 = vsub.f32 %v90_v30, %v92_v31 }
  0x21   :  { %v95_v35 = vsub.f32 %v91_v32, %v93_v33 }
  0x22   :  { %v96_v36 = vmax.f32 %v94_v34, 0.0 }
  0x23   :  { %v97_v37 = vmax.f32 %v95_v35, 0.0 }
  0x24   :  { %v98_v38 = vadd.f32 1e-06, %v96_v36 }
  0x25   :  { %v99_v39 = vadd.f32 1e-06, %v97_v37 }
  0x26   :  { %241 = vrsqrt.f32 %v98_v38  ;;  %vm106_vm2 = vweird.f32 %v98_v38 }
  0x27   :  { %243 = vrsqrt.f32 %v99_v39  ;;  %vm116_vm4 = vweird.f32 %v99_v39 }
  0x2c   :  { %v242_v40 = vpop.eup %241 }
  0x2d   :  { %v244_v41 = vpop.eup %243  ;;  %v101_v42 = vmul.f32 %v242_v40, %v98_v38  ;;  %vm107_vm3 = vweird.f32 %v242_v40 }
  0x2e   :  { %v111_v43 = vmul.f32 %v244_v41, %v99_v39  ;;  %vm117_vm5 = vweird.f32 %v244_v41  ;;  %vm108_vm6 = vmor %vm106_vm2, %vm107_vm3 }
  0x2f   :  { %v102_v44 = vmul.f32 %v242_v40, %v101_v42  ;;  %vm118_vm7 = vmor %vm116_vm4, %vm117_vm5 }
  0x30   :  { %v112_v45 = vmul.f32 %v244_v41, %v111_v43 }
  0x31   :  { %v103_v46 = vmul.f32 0.5, %v102_v44 }
  0x32   :  { %v113_v47 = vmul.f32 0.5, %v112_v45 }
  0x33   :  { %v104_v48 = vsub.f32 1.5, %v103_v46 }
  0x34   :  { %v114_v49 = vsub.f32 1.5, %v113_v47 }
  0x35   :  { %v105_v50 = vmul.f32 %v242_v40, %v104_v48 }
  0x36   :  { %v115_v51 = vmul.f32 %v244_v41, %v114_v49 }
  0x37   :  { %v109_v54 = vsel %vm108_vm6, %v242_v40, %v105_v50 }
  0x38   :  { %v119_v55 = vsel %vm118_vm7, %v244_v41, %v115_v51  ;;  %v137_v56 = vmul.f32 %v129_v52, %v109_v54  ;;  %v138_v11 = vmul.f32 %v130_v63, %v109_v54  ;;  %v139_v13 = vmul.f32 %v131_v3, %v109_v54 }
  0x39   :  { %v141_v57 = vmul.f32 %v133_v53, %v119_v55  ;;  %v142_v2 = vmul.f32 %v134_v0, %v119_v55  ;;  %v140_v15 = vmul.f32 %v132_v4, %v109_v54  ;;  %v144_v16 = vmul.f32 %v136_v10, %v119_v55 }
  0x3a   :  { %v143_v20 = vmul.f32 %v135_v12, %v119_v55 }
  0x5e   :  { %v176_v58 = vpop.permute.xlu2 %175 }
  0x66   :  { %v181_v14 = vpop.permute.xlu2 %180 }
  0x74   :  { %v158_v59 = vpop.permute.xlu1 %157  ;;  %v148_v60 = vpop.permute.xlu0 %147 }
  0x75   :  { %v165_v61 = vmul.f32 %v148_v60, %v137_v56  ;;  %v169_v62 = vmul.f32 %v148_v60, %v141_v57  ;;  %v167_v26 = vmul.f32 %v158_v59, %v139_v13  ;;  %v171_v22 = vmul.f32 %v158_v59, %v143_v20 }
  0x77   :  { %v193_v1 = vadd.f32 %v176_v58, %v165_v61  ;;  %v197_v9 = vadd.f32 %v176_v58, %v169_v62 }
  0x79   :  { %201 = vst.msk [vmem:[#allocation2] sm:$0xff] %vm20_vm0, %v193_v1 }
  0x7a   :  { %205 = vst.msk [vmem:[#allocation2 + $0x20] sm:$0xff] %vm20_vm0, %v197_v9 }
  0x7c   :  { %v163_v5 = vpop.permute.xlu1 %162  ;;  %v153_v6 = vpop.permute.xlu0 %152 }
  0x7d   :  { %v166_v7 = vmul.f32 %v153_v6, %v138_v11  ;;  %v170_v8 = vmul.f32 %v153_v6, %v142_v2  ;;  %v168_v27 = vmul.f32 %v163_v5, %v140_v15  ;;  %v172_v21 = vmul.f32 %v163_v5, %v144_v16 }
  0x7f   :  { %v194_v17 = vadd.f32 %v181_v14, %v166_v7  ;;  %v198_v19 = vadd.f32 %v181_v14, %v170_v8 }
  0x81   :  { %202 = vst.msk [vmem:[#allocation2 + $0x8] sm:$0xff] %vm20_vm0, %v194_v17 }
  0x82   :  { %206 = vst.msk [vmem:[#allocation2 + $0x28] sm:$0xff] %vm20_vm0, %v198_v19 }
  0x84   :  { %v191_v18 = vpop.permute.xlu1 %190  ;;  %v186_v23 = vpop.permute.xlu0 %185 }
  0x85   :  { %v196_v24 = vadd.f32 %v191_v18, %v168_v27  ;;  %v200_v25 = vadd.f32 %v191_v18, %v172_v21  ;;  %v195_v28 = vadd.f32 %v186_v23, %v167_v26  ;;  %v199_v29 = vadd.f32 %v186_v23, %v171_v22 }
  0x87   :  { %204 = vst.msk [vmem:[#allocation2 + $0x18] sm:$0xff] %vm20_vm0, %v196_v24 }
  0x88   :  { %208 = vst.msk [vmem:[#allocation2 + $0x38] sm:$0xff] %vm20_vm0, %v200_v25 }
  0x89   :  { %203 = vst.msk [vmem:[#allocation2 + $0x10] sm:$0xff] %vm20_vm0, %v195_v28 }
  0x8a   :  { %207 = vst.msk [vmem:[#allocation2 + $0x30] sm:$0xff] %vm20_vm0, %v199_v29 }
  0x8b   :  { %221 = dma.vmem_to_hbm [thread:$0]  %s214_s12, 1024, %s216_s15, [#allocation3], %s274_s16, %s274_s16, %s275_s17  }
  0x8c   :  { %269 = dma.done.wait [#allocation3], 1024  }
  0x8d   :  { %270 = vsyncadd [#allocation3], 4294966272 }
  0x8e   :  { %226 = vsyncpa [#allocation3], 1 }

</bundles_post_ra>
